<compile_context>
chip_gen: v5e
topology: v5e:2x2
jax: 0.10.0
libtpu: 0.0.40
codegen_flags: <defaults>
</compile_context>

<pallas_src>
import functools

import jax
import jax.numpy as jnp
from jax import lax
from jax.experimental import pallas as pl
from jax.experimental.pallas import tpu as pltpu

EPS = 1e-6   # allennlp LayerNorm: gamma * (x - mean) / (std + eps) + beta, biased variance
LANE = 128
SUBLANE = 8


def _masked_layer_norm(x, gamma, beta, mask, inv_d):
    """LayerNorm over the real (unpadded) feature lanes only.

    One pass: sum and sum-of-squares, var = E[x^2] - mean^2; reciprocal on the EUP.
    Padded lanes come out as 0 because gamma/beta are zero-padded there.
    """
    xm = x * mask
    s = jnp.sum(xm, axis=-1, keepdims=True)
    ss = jnp.sum(xm * xm, axis=-1, keepdims=True)
    mean = s * inv_d
    var = jnp.maximum(ss * inv_d - mean * mean, 0.0)
    inv_std = pl.reciprocal(jnp.sqrt(var) + EPS, approx=True)
    return gamma * ((x - mean) * inv_std) + beta


def _gcn_fused_kernel(x_ref, a_ref,
                      w1_ref, b1_ref, w2_ref, b2_ref,   # FeedForward (2 linear layers)
                      g1_ref, be1_ref,                  # feedforward_layer_norm
                      wg_ref, bg_ref,                   # GCN NodeApplyModule linear
                      g2_ref, be2_ref,                  # layer_norm
                      out_ref,
                      *, d_real, inv_d):
    layer = pl.program_id(0)

    # Layer 0: seed the resident feature slab from the (padded) input features.
    @pl.when(layer == 0)
    def _():
        out_ref[...] = x_ref[...]

    x = out_ref[...]          # previous layer's output, resident in VMEM across the grid
    dp = x.shape[-1]

    # (1, Dp) parameter rows loaded once per layer (grid step); broadcasts happen on use.
    b1 = b1_ref[...]
    b2 = b2_ref[...]
    g1 = g1_ref[...]
    be1 = be1_ref[...]
    bg = bg_ref[...]
    g2 = g2_ref[...]
    be2 = be2_ref[...]

    # Lane mask restricting LayerNorm statistics to the real feature width.
    lane = lax.broadcasted_iota(jnp.int32, (1, dp), 1)
    mask = (lane < d_real).astype(jnp.float32)

    # FeedForward: Linear -> ReLU -> Linear  (internal dropout = identity)
    h = jnp.dot(x, w1_ref[...], preferred_element_type=jnp.float32) + b1
    h = jnp.maximum(h, 0.0)
    h = jnp.dot(h, w2_ref[...], preferred_element_type=jnp.float32) + b2

    # Residual + feedforward layer norm (shapes match, so the residual branch is taken).
    z = _masked_layer_norm(h + x, g1, be1, mask, inv_d)

    # GCN: update_all(copy_src, sum) == dense A @ z, then apply_nodes Linear + ReLU.
    agg = jnp.dot(a_ref[...], z, preferred_element_type=jnp.float32)
    att = jnp.dot(agg, wg_ref[...], preferred_element_type=jnp.float32) + bg
    att = jnp.maximum(att, 0.0)

    # Residual (dropout = identity) + layer norm -> becomes next layer's input.
    out_ref[...] = _masked_layer_norm(att + z, g2, be2, mask, inv_d)


# ----------------------------- wrapper (padding, stacking, pallas_call) ---------------

def _pad_mat(w, dp):
    d0, d1 = w.shape
    return jnp.zeros((dp, dp), w.dtype).at[:d0, :d1].set(w)


def _pad_row(v, dp):
    return jnp.zeros((1, dp), v.dtype).at[:, :v.shape[-1]].set(v)


def _stack_layer_params(layer_params, dp):
    mats = ("w1", "w2", "wg")
    rows = ("b1", "b2", "g1", "be1", "bg", "g2", "be2")
    s = {k: jnp.stack([_pad_mat(p[k], dp) for p in layer_params]) for k in mats}
    s.update({k: jnp.stack([_pad_row(p[k], dp) for p in layer_params]) for k in rows})
    return s


def gcn_net_forward(features, adjacency, layer_params):
    """GCNNet.forward: all nlayers fused into one pallas_call (grid over the layer axis)."""
    n, d = features.shape
    nlayers = len(layer_params)
    dp = ((d + LANE - 1) // LANE) * LANE              # lane-dense feature width
    np_ = ((n + SUBLANE - 1) // SUBLANE) * SUBLANE    # sublane-aligned node count

    x_pad = jnp.zeros((np_, dp), jnp.float32).at[:n, :d].set(features.astype(jnp.float32))
    a_pad = jnp.zeros((np_, np_), jnp.float32).at[:n, :n].set(adjacency.astype(jnp.float32))
    sp = _stack_layer_params(layer_params, dp)

    kernel = functools.partial(_gcn_fused_kernel, d_real=d, inv_d=1.0 / d)

    w_spec = pl.BlockSpec((None, dp, dp), lambda l: (l, 0, 0))   # one layer's weight matrix
    r_spec = pl.BlockSpec((None, 1, dp), lambda l: (l, 0, 0))    # one layer's (1, Dp) row
    feat_spec = pl.BlockSpec((np_, dp), lambda l: (0, 0))        # resident across all layers
    adj_spec = pl.BlockSpec((np_, np_), lambda l: (0, 0))        # resident across all layers

    out_pad = pl.pallas_call(
        kernel,
        out_shape=jax.ShapeDtypeStruct((np_, dp), jnp.float32),
        grid_spec=pltpu.PrefetchScalarGridSpec(
            num_scalar_prefetch=0,
            grid=(nlayers,),
            in_specs=[feat_spec, adj_spec,
                      w_spec, r_spec, w_spec, r_spec,    # w1 b1 w2 b2
                      r_spec, r_spec,                    # g1 be1
                      w_spec, r_spec, r_spec, r_spec],   # wg bg g2 be2
            out_specs=feat_spec,
        ),
        # Feature slab is updated in place (input 0 aliases the single output).
        input_output_aliases={0: 0},
        compiler_params=pltpu.CompilerParams(
            dimension_semantics=("arbitrary",),          # layers are strictly sequential
            vmem_limit_bytes=48 * 1024 * 1024,           # under v7x 64 MiB; above default caps
        ),
    )(x_pad, a_pad, sp["w1"], sp["b1"], sp["w2"], sp["b2"],
      sp["g1"], sp["be1"], sp["wg"], sp["bg"], sp["g2"], sp["be2"])

    return out_pad[:n, :d]


# ----------------------------- parameter setup + pure-JAX reference -------------------

def init_layer_params(key, hdim):
    ks = jax.random.split(key, 3)
    scale = 1.0 / jnp.sqrt(hdim)
    # Linear weights stored pre-transposed as (in, out) for x @ W; PyTorch keeps (out, in).
    return {
        "w1": jax.random.uniform(ks[0], (hdim, hdim), jnp.float32, -scale, scale),
        "b1": jnp.full((1, hdim), 0.01, jnp.float32),
        "w2": jax.random.uniform(ks[1], (hdim, hdim), jnp.float32, -scale, scale),
        "b2": jnp.full((1, hdim), -0.01, jnp.float32),
        "g1": jnp.ones((1, hdim), jnp.float32),
        "be1": jnp.zeros((1, hdim), jnp.float32),
        "wg": jax.random.uniform(ks[2], (hdim, hdim), jnp.float32, -scale, scale),
        "bg": jnp.full((1, hdim), 0.02, jnp.float32),
        "g2": jnp.ones((1, hdim), jnp.float32),
        "be2": jnp.zeros((1, hdim), jnp.float32),
    }


def _ref_layer_norm(x, gamma, beta):
    mean = jnp.mean(x, axis=-1, keepdims=True)
    var = jnp.mean((x - mean) ** 2, axis=-1, keepdims=True)
    return gamma * (x - mean) / (jnp.sqrt(var) + EPS) + beta


def ref_forward(features, adjacency, layer_params):
    out = features
    for p in layer_params:
        h = jnp.maximum(out @ p["w1"] + p["b1"], 0.0)
        h = h @ p["w2"] + p["b2"]
        z = _ref_layer_norm(h + out, p["g1"], p["be1"])
        att = jnp.maximum((adjacency @ z) @ p["wg"] + p["bg"], 0.0)
        out = _ref_layer_norm(att + z, p["g2"], p["be2"])
    return out


if __name__ == "__main__":
    N, HDIM, NLAYERS = 8, 32, 2
    key = jax.random.PRNGKey(0)
    k_feat, k_adj, k_par = jax.random.split(key, 3)

    features = jax.random.normal(k_feat, (N, HDIM), jnp.float32)
    # deterministic sparse-ish directed graph as dense adjacency [dst, src]
    adjacency = jax.random.bernoulli(k_adj, 0.4, (N, N)).astype(jnp.float32)

    layer_keys = jax.random.split(k_par, NLAYERS)
    layer_params = [init_layer_params(k, HDIM) for k in layer_keys]

    out = gcn_net_forward(features, adjacency, layer_params)
    out = jax.block_until_ready(out)

    ref = ref_forward(features, adjacency, layer_params)
    assert out.shape == (N, HDIM)
    # Tolerance covers the EUP approximate reciprocal used inside the in-kernel LayerNorm.
    assert jnp.allclose(out, ref, atol=5e-3, rtol=5e-3), "mismatch vs pure-JAX reference"

    print("KERNEL_OK")
</pallas_src>

<mosaic_0001>
module attributes {stable_mosaic.version = 11 : i64} {
  func.func @_gcn_fused_kernel(%arg0: i32, %arg1: memref<8x128xf32, #tpu.memory_space<vmem>>, %arg2: memref<8x8xf32, #tpu.memory_space<vmem>>, %arg3: memref<1x128x128xf32, #tpu.memory_space<vmem>>, %arg4: memref<1x1x128xf32, #tpu.memory_space<vmem>>, %arg5: memref<1x128x128xf32, #tpu.memory_space<vmem>>, %arg6: memref<1x1x128xf32, #tpu.memory_space<vmem>>, %arg7: memref<1x1x128xf32, #tpu.memory_space<vmem>>, %arg8: memref<1x1x128xf32, #tpu.memory_space<vmem>>, %arg9: memref<1x128x128xf32, #tpu.memory_space<vmem>>, %arg10: memref<1x1x128xf32, #tpu.memory_space<vmem>>, %arg11: memref<1x1x128xf32, #tpu.memory_space<vmem>>, %arg12: memref<1x1x128xf32, #tpu.memory_space<vmem>>, %arg13: memref<8x128xf32, #tpu.memory_space<vmem>>) attributes {dimension_semantics = [#tpu.dimension_semantics<arbitrary>], iteration_bounds = array<i64: 2>, scalar_prefetch = 0 : i64, scratch_operands = 0 : i64, tpu.core_type = #tpu.core_type<tc>, window_params = [{pipeline_mode = #tpu.pipeline_mode<synchronous>, transform_indices = @transform_0, window_bounds = array<i64: 8, 128>}, {pipeline_mode = #tpu.pipeline_mode<synchronous>, transform_indices = @transform_1, window_bounds = array<i64: 8, 8>}, {transform_indices = @transform_2, window_bounds = array<i64: 1, 128, 128>}, {transform_indices = @transform_3, window_bounds = array<i64: 1, 1, 128>}, {transform_indices = @transform_4, window_bounds = array<i64: 1, 128, 128>}, {transform_indices = @transform_5, window_bounds = array<i64: 1, 1, 128>}, {transform_indices = @transform_6, window_bounds = array<i64: 1, 1, 128>}, {transform_indices = @transform_7, window_bounds = array<i64: 1, 1, 128>}, {transform_indices = @transform_8, window_bounds = array<i64: 1, 128, 128>}, {transform_indices = @transform_9, window_bounds = array<i64: 1, 1, 128>}, {transform_indices = @transform_10, window_bounds = array<i64: 1, 1, 128>}, {transform_indices = @transform_11, window_bounds = array<i64: 1, 1, 128>}, {pipeline_mode = #tpu.pipeline_mode<synchronous>, transform_indices = @transform_12, window_bounds = array<i64: 8, 128>}]} {
    %c0_i32 = arith.constant 0 : i32
    %0 = arith.cmpi eq, %arg0, %c0_i32 : i32
    %1 = arith.extui %0 : i1 to i32
    %c0_i32_0 = arith.constant 0 : i32
    %2 = arith.cmpi ne, %1, %c0_i32_0 : i32
    scf.if %2 {
      %c0_53 = arith.constant 0 : index
      %c0_54 = arith.constant 0 : index
      %101 = vector.load %arg1[%c0_53, %c0_54] : memref<8x128xf32, #tpu.memory_space<vmem>>, vector<8x128xf32>
      %c0_55 = arith.constant 0 : index
      %c0_56 = arith.constant 0 : index
      %102 = vector.load %arg13[%c0_55, %c0_56] : memref<8x128xf32, #tpu.memory_space<vmem>>, vector<8x128xf32>
      tpu.vector_store %arg13[%c0_55, %c0_56], %101 {strides = array<i32>} : memref<8x128xf32, #tpu.memory_space<vmem>>, vector<8x128xf32>,
    } else {
    }
    %c0 = arith.constant 0 : index
    %c0_1 = arith.constant 0 : index
    %3 = vector.load %arg13[%c0, %c0_1] : memref<8x128xf32, #tpu.memory_space<vmem>>, vector<8x128xf32>
    %c0_2 = arith.constant 0 : index
    %c0_3 = arith.constant 0 : index
    %c0_4 = arith.constant 0 : index
    %4 = vector.load %arg4[%c0_2, %c0_3, %c0_4] : memref<1x1x128xf32, #tpu.memory_space<vmem>>, vector<1x1x128xf32>
    %5 = vector.shape_cast %4 : vector<1x1x128xf32> to vector<1x128xf32>
    %c0_5 = arith.constant 0 : index
    %c0_6 = arith.constant 0 : index
    %c0_7 = arith.constant 0 : index
    %6 = vector.load %arg6[%c0_5, %c0_6, %c0_7] : memref<1x1x128xf32, #tpu.memory_space<vmem>>, vector<1x1x128xf32>
    %7 = vector.shape_cast %6 : vector<1x1x128xf32> to vector<1x128xf32>
    %c0_8 = arith.constant 0 : index
    %c0_9 = arith.constant 0 : index
    %c0_10 = arith.constant 0 : index
    %8 = vector.load %arg7[%c0_8, %c0_9, %c0_10] : memref<1x1x128xf32, #tpu.memory_space<vmem>>, vector<1x1x128xf32>
    %9 = vector.shape_cast %8 : vector<1x1x128xf32> to vector<1x128xf32>
    %c0_11 = arith.constant 0 : index
    %c0_12 = arith.constant 0 : index
    %c0_13 = arith.constant 0 : index
    %10 = vector.load %arg8[%c0_11, %c0_12, %c0_13] : memref<1x1x128xf32, #tpu.memory_space<vmem>>, vector<1x1x128xf32>
    %11 = vector.shape_cast %10 : vector<1x1x128xf32> to vector<1x128xf32>
    %c0_14 = arith.constant 0 : index
    %c0_15 = arith.constant 0 : index
    %c0_16 = arith.constant 0 : index
    %12 = vector.load %arg10[%c0_14, %c0_15, %c0_16] : memref<1x1x128xf32, #tpu.memory_space<vmem>>, vector<1x1x128xf32>
    %13 = vector.shape_cast %12 : vector<1x1x128xf32> to vector<1x128xf32>
    %c0_17 = arith.constant 0 : index
    %c0_18 = arith.constant 0 : index
    %c0_19 = arith.constant 0 : index
    %14 = vector.load %arg11[%c0_17, %c0_18, %c0_19] : memref<1x1x128xf32, #tpu.memory_space<vmem>>, vector<1x1x128xf32>
    %15 = vector.shape_cast %14 : vector<1x1x128xf32> to vector<1x128xf32>
    %c0_20 = arith.constant 0 : index
    %c0_21 = arith.constant 0 : index
    %c0_22 = arith.constant 0 : index
    %16 = vector.load %arg12[%c0_20, %c0_21, %c0_22] : memref<1x1x128xf32, #tpu.memory_space<vmem>>, vector<1x1x128xf32>
    %17 = vector.shape_cast %16 : vector<1x1x128xf32> to vector<1x128xf32>
    %18 = tpu.iota {dimensions = array<i32: 1>} : vector<1x128xi32>
    %c32_i32 = arith.constant 32 : i32
    %19 = vector.broadcast %c32_i32 : i32 to vector<1x128xi32>
    %20 = arith.cmpi slt, %18, %19 : vector<1x128xi32>
    %21 = arith.extui %20 : vector<1x128xi1> to vector<1x128xi32>
    %22 = arith.sitofp %21 : vector<1x128xi32> to vector<1x128xf32>
    %c0_23 = arith.constant 0 : index
    %c0_24 = arith.constant 0 : index
    %c0_25 = arith.constant 0 : index
    %23 = vector.load %arg3[%c0_23, %c0_24, %c0_25] : memref<1x128x128xf32, #tpu.memory_space<vmem>>, vector<1x128x128xf32>
    %24 = vector.shape_cast %23 : vector<1x128x128xf32> to vector<128x128xf32>
    %cst = arith.constant dense<0.000000e+00> : vector<8x128xf32>
    %25 = tpu.matmul %3, %24, %cst {dimension_numbers = #tpu.dot_dimension_numbers<[1], [0], [0], [1], [0, 0, 1, 1], [], []>} : vector<8x128xf32>, vector<128x128xf32>, vector<8x128xf32> -> vector<8x128xf32>
    %26 = vector.broadcast %5 : vector<1x128xf32> to vector<8x128xf32>
    %27 = arith.addf %25, %26 : vector<8x128xf32>
    %cst_26 = arith.constant 0.000000e+00 : f32
    %28 = vector.broadcast %cst_26 : f32 to vector<8x128xf32>
    %29 = arith.maximumf %27, %28 : vector<8x128xf32>
    %c0_27 = arith.constant 0 : index
    %c0_28 = arith.constant 0 : index
    %c0_29 = arith.constant 0 : index
    %30 = vector.load %arg5[%c0_27, %c0_28, %c0_29] : memref<1x128x128xf32, #tpu.memory_space<vmem>>, vector<1x128x128xf32>
    %31 = vector.shape_cast %30 : vector<1x128x128xf32> to vector<128x128xf32>
    %cst_30 = arith.constant dense<0.000000e+00> : vector<8x128xf32>
    %32 = tpu.matmul %29, %31, %cst_30 {dimension_numbers = #tpu.dot_dimension_numbers<[1], [0], [0], [1], [0, 0, 1, 1], [], []>} : vector<8x128xf32>, vector<128x128xf32>, vector<8x128xf32> -> vector<8x128xf32>
    %33 = vector.broadcast %7 : vector<1x128xf32> to vector<8x128xf32>
    %34 = arith.addf %32, %33 : vector<8x128xf32>
    %35 = arith.addf %34, %3 : vector<8x128xf32>
    %36 = vector.broadcast %22 : vector<1x128xf32> to vector<8x128xf32>
    %37 = arith.mulf %35, %36 : vector<8x128xf32>
    %cst_31 = arith.constant dense<0.000000e+00> : vector<8xf32>
    %38 = vector.multi_reduction <add>, %37, %cst_31 [1] : vector<8x128xf32> to vector<8xf32>
    %39 = vector.shape_cast %38 : vector<8xf32> to vector<8x1xf32>
    %40 = arith.mulf %37, %37 : vector<8x128xf32>
    %cst_32 = arith.constant dense<0.000000e+00> : vector<8xf32>
    %41 = vector.multi_reduction <add>, %40, %cst_32 [1] : vector<8x128xf32> to vector<8xf32>
    %42 = vector.shape_cast %41 : vector<8xf32> to vector<8x1xf32>
    %cst_33 = arith.constant 3.125000e-02 : f32
    %43 = vector.broadcast %cst_33 : f32 to vector<8x1xf32>
    %44 = arith.mulf %39, %43 : vector<8x1xf32>
    %cst_34 = arith.constant 3.125000e-02 : f32
    %45 = vector.broadcast %cst_34 : f32 to vector<8x1xf32>
    %46 = arith.mulf %42, %45 : vector<8x1xf32>
    %47 = arith.mulf %44, %44 : vector<8x1xf32>
    %48 = arith.subf %46, %47 : vector<8x1xf32>
    %cst_35 = arith.constant 0.000000e+00 : f32
    %49 = vector.broadcast %cst_35 : f32 to vector<8x1xf32>
    %50 = arith.maximumf %48, %49 : vector<8x1xf32>
    %51 = math.sqrt %50 : vector<8x1xf32>
    %cst_36 = arith.constant 9.99999997E-7 : f32
    %52 = vector.broadcast %cst_36 : f32 to vector<8x1xf32>
    %53 = arith.addf %51, %52 : vector<8x1xf32>
    %54 = tpu.reciprocal %53 {approx = true} : vector<8x1xf32> -> vector<8x1xf32>
    %55 = vector.broadcast %44 : vector<8x1xf32> to vector<8x128xf32>
    %56 = arith.subf %35, %55 : vector<8x128xf32>
    %57 = vector.broadcast %54 : vector<8x1xf32> to vector<8x128xf32>
    %58 = arith.mulf %56, %57 : vector<8x128xf32>
    %59 = vector.broadcast %9 : vector<1x128xf32> to vector<8x128xf32>
    %60 = arith.mulf %59, %58 : vector<8x128xf32>
    %61 = vector.broadcast %11 : vector<1x128xf32> to vector<8x128xf32>
    %62 = arith.addf %60, %61 : vector<8x128xf32>
    %c0_37 = arith.constant 0 : index
    %c0_38 = arith.constant 0 : index
    %63 = vector.load %arg2[%c0_37, %c0_38] : memref<8x8xf32, #tpu.memory_space<vmem>>, vector<8x8xf32>
    %cst_39 = arith.constant dense<0.000000e+00> : vector<8x128xf32>
    %64 = tpu.matmul %63, %62, %cst_39 {dimension_numbers = #tpu.dot_dimension_numbers<[1], [0], [0], [1], [0, 0, 1, 1], [], []>} : vector<8x8xf32>, vector<8x128xf32>, vector<8x128xf32> -> vector<8x128xf32>
    %c0_40 = arith.constant 0 : index
    %c0_41 = arith.constant 0 : index
    %c0_42 = arith.constant 0 : index
    %65 = vector.load %arg9[%c0_40, %c0_41, %c0_42] : memref<1x128x128xf32, #tpu.memory_space<vmem>>, vector<1x128x128xf32>
    %66 = vector.shape_cast %65 : vector<1x128x128xf32> to vector<128x128xf32>
    %cst_43 = arith.constant dense<0.000000e+00> : vector<8x128xf32>
    %67 = tpu.matmul %64, %66, %cst_43 {dimension_numbers = #tpu.dot_dimension_numbers<[1], [0], [0], [1], [0, 0, 1, 1], [], []>} : vector<8x128xf32>, vector<128x128xf32>, vector<8x128xf32> -> vector<8x128xf32>
    %68 = vector.broadcast %13 : vector<1x128xf32> to vector<8x128xf32>
    %69 = arith.addf %67, %68 : vector<8x128xf32>
    %cst_44 = arith.constant 0.000000e+00 : f32
    %70 = vector.broadcast %cst_44 : f32 to vector<8x128xf32>
    %71 = arith.maximumf %69, %70 : vector<8x128xf32>
    %72 = arith.addf %71, %62 : vector<8x128xf32>
    %73 = vector.broadcast %22 : vector<1x128xf32> to vector<8x128xf32>
    %74 = arith.mulf %72, %73 : vector<8x128xf32>
    %cst_45 = arith.constant dense<0.000000e+00> : vector<8xf32>
    %75 = vector.multi_reduction <add>, %74, %cst_45 [1] : vector<8x128xf32> to vector<8xf32>
    %76 = vector.shape_cast %75 : vector<8xf32> to vector<8x1xf32>
    %77 = arith.mulf %74, %74 : vector<8x128xf32>
    %cst_46 = arith.constant dense<0.000000e+00> : vector<8xf32>
    %78 = vector.multi_reduction <add>, %77, %cst_46 [1] : vector<8x128xf32> to vector<8xf32>
    %79 = vector.shape_cast %78 : vector<8xf32> to vector<8x1xf32>
    %cst_47 = arith.constant 3.125000e-02 : f32
    %80 = vector.broadcast %cst_47 : f32 to vector<8x1xf32>
    %81 = arith.mulf %76, %80 : vector<8x1xf32>
    %cst_48 = arith.constant 3.125000e-02 : f32
    %82 = vector.broadcast %cst_48 : f32 to vector<8x1xf32>
    %83 = arith.mulf %79, %82 : vector<8x1xf32>
    %84 = arith.mulf %81, %81 : vector<8x1xf32>
    %85 = arith.subf %83, %84 : vector<8x1xf32>
    %cst_49 = arith.constant 0.000000e+00 : f32
    %86 = vector.broadcast %cst_49 : f32 to vector<8x1xf32>
    %87 = arith.maximumf %85, %86 : vector<8x1xf32>
    %88 = math.sqrt %87 : vector<8x1xf32>
    %cst_50 = arith.constant 9.99999997E-7 : f32
    %89 = vector.broadcast %cst_50 : f32 to vector<8x1xf32>
    %90 = arith.addf %88, %89 : vector<8x1xf32>
    %91 = tpu.reciprocal %90 {approx = true} : vector<8x1xf32> -> vector<8x1xf32>
    %92 = vector.broadcast %81 : vector<8x1xf32> to vector<8x128xf32>
    %93 = arith.subf %72, %92 : vector<8x128xf32>
    %94 = vector.broadcast %91 : vector<8x1xf32> to vector<8x128xf32>
    %95 = arith.mulf %93, %94 : vector<8x128xf32>
    %96 = vector.broadcast %15 : vector<1x128xf32> to vector<8x128xf32>
    %97 = arith.mulf %96, %95 : vector<8x128xf32>
    %98 = vector.broadcast %17 : vector<1x128xf32> to vector<8x128xf32>
    %99 = arith.addf %97, %98 : vector<8x128xf32>
    %c0_51 = arith.constant 0 : index
    %c0_52 = arith.constant 0 : index
    %100 = vector.load %arg13[%c0_51, %c0_52] : memref<8x128xf32, #tpu.memory_space<vmem>>, vector<8x128xf32>
    tpu.vector_store %arg13[%c0_51, %c0_52], %99 {strides = array<i32>} : memref<8x128xf32, #tpu.memory_space<vmem>>, vector<8x128xf32>,
    return
  }
  func.func @transform_0(%arg0: i32) -> (i32, i32) {
    %c0_i32 = arith.constant 0 : i32
    %c0_i32_0 = arith.constant 0 : i32
    %c0_i32_1 = arith.constant 0 : i32
    return %c0_i32, %c0_i32_0 : i32, i32
  }
  func.func @transform_1(%arg0: i32) -> (i32, i32) {
    %c0_i32 = arith.constant 0 : i32
    %c0_i32_0 = arith.constant 0 : i32
    %c0_i32_1 = arith.constant 0 : i32
    return %c0_i32, %c0_i32_0 : i32, i32
  }
  func.func @transform_2(%arg0: i32) -> (i32, i32, i32) {
    %c0_i32 = arith.constant 0 : i32
    %c0_i32_0 = arith.constant 0 : i32
    %c0_i32_1 = arith.constant 0 : i32
    return %arg0, %c0_i32, %c0_i32_0 : i32, i32, i32
  }
  func.func @transform_3(%arg0: i32) -> (i32, i32, i32) {
    %c0_i32 = arith.constant 0 : i32
    %c0_i32_0 = arith.constant 0 : i32
    %c0_i32_1 = arith.constant 0 : i32
    return %arg0, %c0_i32, %c0_i32_0 : i32, i32, i32
  }
  func.func @transform_4(%arg0: i32) -> (i32, i32, i32) {
    %c0_i32 = arith.constant 0 : i32
    %c0_i32_0 = arith.constant 0 : i32
    %c0_i32_1 = arith.constant 0 : i32
    return %arg0, %c0_i32, %c0_i32_0 : i32, i32, i32
  }
  func.func @transform_5(%arg0: i32) -> (i32, i32, i32) {
    %c0_i32 = arith.constant 0 : i32
    %c0_i32_0 = arith.constant 0 : i32
    %c0_i32_1 = arith.constant 0 : i32
    return %arg0, %c0_i32, %c0_i32_0 : i32, i32, i32
  }
  func.func @transform_6(%arg0: i32) -> (i32, i32, i32) {
    %c0_i32 = arith.constant 0 : i32
    %c0_i32_0 = arith.constant 0 : i32
    %c0_i32_1 = arith.constant 0 : i32
    return %arg0, %c0_i32, %c0_i32_0 : i32, i32, i32
  }
  func.func @transform_7(%arg0: i32) -> (i32, i32, i32) {
    %c0_i32 = arith.constant 0 : i32
    %c0_i32_0 = arith.constant 0 : i32
    %c0_i32_1 = arith.constant 0 : i32
    return %arg0, %c0_i32, %c0_i32_0 : i32, i32, i32
  }
  func.func @transform_8(%arg0: i32) -> (i32, i32, i32) {
    %c0_i32 = arith.constant 0 : i32
    %c0_i32_0 = arith.constant 0 : i32
    %c0_i32_1 = arith.constant 0 : i32
    return %arg0, %c0_i32, %c0_i32_0 : i32, i32, i32
  }
  func.func @transform_9(%arg0: i32) -> (i32, i32, i32) {
    %c0_i32 = arith.constant 0 : i32
    %c0_i32_0 = arith.constant 0 : i32
    %c0_i32_1 = arith.constant 0 : i32
    return %arg0, %c0_i32, %c0_i32_0 : i32, i32, i32
  }
  func.func @transform_10(%arg0: i32) -> (i32, i32, i32) {
    %c0_i32 = arith.constant 0 : i32
    %c0_i32_0 = arith.constant 0 : i32
    %c0_i32_1 = arith.constant 0 : i32
    return %arg0, %c0_i32, %c0_i32_0 : i32, i32, i32
  }
  func.func @transform_11(%arg0: i32) -> (i32, i32, i32) {
    %c0_i32 = arith.constant 0 : i32
    %c0_i32_0 = arith.constant 0 : i32
    %c0_i32_1 = arith.constant 0 : i32
    return %arg0, %c0_i32, %c0_i32_0 : i32, i32, i32
  }
  func.func @transform_12(%arg0: i32) -> (i32, i32) {
    %c0_i32 = arith.constant 0 : i32
    %c0_i32_0 = arith.constant 0 : i32
    %c0_i32_1 = arith.constant 0 : i32
    return %c0_i32, %c0_i32_0 : i32, i32
  }
}

</mosaic_0001>

<bundles_post_ra>
// kernel: tpu_custom_call.1
= control target key start
LH: loop header
LB: loop body
LE: loop exit
PB: predicated region body
PF: predicated region fallthrough
CT: control target
= control target key end

     0   :  { %s1710_s0 = inlined_call_operand.hbm [shape: f32[8,128], index: 0, kind: input, shape index: {}, may-alias: {0,12}]   ;;  %s1711_s1 = inlined_call_operand.vmem [shape: f32[8,8], index: 1, kind: input, shape index: {}]   ;;  %s1712_s2 = inlined_call_operand.hbm [shape: f32[2,128,128], index: 2, kind: input, shape index: {}]   ;;  %s1713_s3 = inlined_call_operand.vmem [shape: f32[2,1,128], index: 3, kind: input, shape index: {}]   ;;  %s1714_s4 = inlined_call_operand.hbm [shape: f32[2,128,128], index: 4, kind: input, shape index: {}]   ;;  %s1715_s5 = inlined_call_operand.vmem [shape: f32[2,1,128], index: 5, kind: input, shape index: {}]   ;;  %s1716_s6 = inlined_call_operand.vmem [shape: f32[2,1,128], index: 6, kind: input, shape index: {}]   ;;  %s1717_s7 = inlined_call_operand.vmem [shape: f32[2,1,128], index: 7, kind: input, shape index: {}]   ;;  %s1718_s8 = inlined_call_operand.hbm [shape: f32[2,128,128], index: 8, kind: input, shape index: {}]   ;;  %s1719_s9 = inlined_call_operand.vmem [shape: f32[2,1,128], index: 9, kind: input, shape index: {}]   ;;  %s1720_s10 = inlined_call_operand.vmem [shape: f32[2,1,128], index: 10, kind: input, shape index: {}]   ;;  %s1721_s11 = inlined_call_operand.vmem [shape: f32[2,1,128], index: 11, kind: input, shape index: {}]   ;;  %s1722_s12 = inlined_call_operand.hbm [shape: f32[8,128], index: 12, kind: output, shape index: {}, may-alias: {0,12}]  }
   0x1   :  { %1730 = sst [smem:[#allocation17_spill]] %s1710_s0 }
   0x2   :  { %1731 = sst [smem:[#allocation18_spill]] %s1711_s1 }
   0x3   :  { %1732 = sst [smem:[#allocation19_spill]] %s1712_s2 }
   0x4   :  { %1733 = sst [smem:[#allocation20_spill]] %s1714_s4 }
   0x5   :  { %1734 = sst [smem:[#allocation21_spill]] %s1718_s8 }
   0x6   :  { %1735 = sst [smem:[#allocation22_spill]] %s1722_s12 }
   0x7   :  { %17 = vsyncpa [#allocation3], 0 }
   0x8   :  { %18 = vsyncpa [#allocation6], 0 }
   0x9   :  { %20 = vsyncpa [#allocation6 + $0x1], 0 }
   0xa   :  { %21 = vsyncpa [#allocation9], 0 }
   0xb   :  { %23 = vsyncpa [#allocation9 + $0x1], 0 }
   0xc   :  { %24 = vsyncpa [#allocation4], 0  ;;  %s1408_s21 = smov 0   ;;  %s1410_s22 = smov 0  }
   0xd   :  { %s1412_s23 = smov 0   ;;  %s1414_s24 = smov 0  }
   0xe LB: > { %s1429_s25 = sadd.s32 1, %s1336_s24   ;;  %s79_s26 = sadd.s32 1, %s1332_s23  ;;  %s1336_s24 = sphi %s1414_s24, %s1751_s24   ;;  %s1332_s23 = sphi %s1412_s23, %s1755_s23   ;;  %s1328_s22 = sphi %s1410_s22, %s1754_s22   ;;  %s1324_s21 = sphi %s1408_s21, %s1753_s21  }
   0xf   : > { %1736 = sst [smem:[#allocation15_spill]] %s1429_s25  ;;  %s76_s27 = ssub.s32 %s1336_s24, %s1429_s25 }
  0x10   : > { %p86_p0 = scmp.ne.s32.totalorder %s1332_s23, %s1328_s22  ;;  %p77_p1 = scmp.eq.s32.totalorder %s76_s27, 0 }
  0x11   : > { %p87_p2 = scmp.eq.s32.totalorder %s1336_s24, 0  ;;  %p1086_p3 = scmp.lt.s32.totalorder %s1336_s24, 2 }
  0x12   : > { %s1439_s28 = scalar_select %p77_p1, %s1332_s23, %s79_s26  }
  0x13   : > { %p88_p4 = por %p87_p2, %p86_p0  ;;  %s386_s29 = sand.u32 1, %s1336_s24  }
  0x14   : > { %1737 = sst [smem:[#allocation16_spill]] %s1439_s28  ;;  %s1723_s30 = sand.u32 1, %s1332_s23  }
  0x15   : > { %s1445_s13 = sshll.u32 %s1723_s30, 7  ;;  %s1448_s14 = sshll.u32 %s1336_s24, 7 }
  0x16   : > { %s1738_s2 = sld [smem:[#allocation19_spill]]  ;;  %s390_s19 = scalar_lea.vmem [#allocation5], %s1445_s13 }
  0x17   : > { %s398_s20 = sshll.u32 %s390_s19, 4  ;;  %p1457_p5 = pnand %p1086_p3, %p88_p4  ;;  %s399_s20 = int_to_ptr.vmem [resolvable:$true] %s398_s20 }
  0x18   : > { %s1461_s27 = scalar_lea.sflag [#allocation6], %s386_s29 }
  0x19   : > { %p1146_p7 = pneg %p1457_p5 }
  0x1c   : > { %s395_s17 = scalar_lea.hbm %s1738_s2, %s1448_s14 }
  0x1d   : > { %s396_s18 = sshll.u32 %s395_s17, 4  ;;  %s1149_s17 = scalar_lea.hbm %s1738_s2, 256  ;;  %s397_s18 = int_to_ptr.hbm [resolvable:$true] %s396_s18 }
  0x1e   : > { %s1142_s30 = sshra.s32 %s397_s18, 4  ;;  %s1143_s30 = int_to_ptr.hbm [resolvable:$true] %s1142_s30 }
  0x1f   : > { %s1144_s28 = scalar_lea.hbm %s1143_s30, 128  ;;  %p1150_p10 = scmp.lt.s32.totalorder %s1143_s30, %s1738_s2 }
  0x20   : > { %p1145_p6 = scmp.ne.s32.totalorder %s1143_s30, %s1144_s28  ;;  %p1151_p11 = scmp.lt.s32.totalorder %s1149_s17, %s1144_s28 }
  0x22   : > { %p1147_p8 = pnand %p1146_p7, %p1145_p6  ;;  %p1152_p12 = por %p1151_p11, %p1150_p10 }
  0x24   : > { %p1148_p9 = pneg %p1147_p8 }
  0x26   : > { %p1153_p13 = pnand %p1152_p12, %p1148_p9 }
  0x28   : > { %1156 = shalt.err (!%p1153_p13)
}
  0x29   : > { %s1726_s29 = smov 128   ;;  %s1728_s12 = smov 8  }
  0x2a   : > { %1078 = dma.hbm_to_vmem [thread:$0]  (!%p1457_p5), %s397_s18, 2048, %s399_s20, %s1461_s27, %s1726_s29, %s1726_s29, %s1728_s12  }
  0x2b   : > { %s1481_s25 = sadd.s32 4294967295, %s1336_s24   ;;  %p92_p0 = scmp.ne.s32.totalorder %s1328_s22, %s1324_s21 }
  0x2c   : > { %p93_p1 = scmp.eq.s32.totalorder %s1481_s25, 0  ;;  %p1030_p2 = scmp.ge.s32.totalorder %s1336_s24, 1 }
  0x2d   : > { %p358_p3 = scmp.lt.s32.totalorder %s1336_s24, 3  ;;  %p1031_p4 = scmp.ne.s32.totalorder %s1481_s25, 0 }
  0x2e   : > { %p1491_p6 = por %p93_p1, %p92_p0  ;;  %s1741_s0 = sld [smem:[#allocation17_spill]] }
  0x2f   : > { %p1498_p8 = pnand %p1030_p2, %p358_p3  ;;  %s1340_s21 = smov [#allocation2]  }
  0x30   : > { %s372_s24 = sshll.u32 %s1340_s21, 4  ;;  %s1743_s4 = sld [smem:[#allocation20_spill]]  ;;  %s373_s24 = int_to_ptr.vmem [resolvable:$true] %s372_s24 }
  0x31   : > { %p1071_p9 = pneg %p1498_p8  ;;  %s418_s15 = scalar_lea.vmem [#allocation7], %s1445_s13 }
  0x32   : > { %s426_s29 = sshll.u32 %s418_s15, 4  ;;  %s427_s29 = int_to_ptr.vmem [resolvable:$true] %s426_s29 }
  0x33   : > { %p1072_p10 = pnand %p1071_p9, %p93_p1 }
  0x34   : > { %s370_s18 = sshll.u32 %s1741_s0, 4  ;;  %s371_s18 = int_to_ptr.hbm [resolvable:$true] %s370_s18 }
  0x35   : > { %1074 = dma.hbm_to_vmem [thread:$0]  (!%p1072_p10), %s371_s18, 128, %s373_s24, [#allocation3]  }
  0x36   : > { %s423_s19 = scalar_lea.hbm %s1743_s4, %s1448_s14  ;;  %s1209_s16 = scalar_lea.hbm %s1743_s4, 256 }
  0x37   : > { %s424_s30 = sshll.u32 %s423_s19, 4  ;;  %s425_s30 = int_to_ptr.hbm [resolvable:$true] %s424_s30 }
  0x38   : > { %s1202_s12 = sshra.s32 %s425_s30, 4  ;;  %s1203_s12 = int_to_ptr.hbm [resolvable:$true] %s1202_s12 }
  0x39   : > { %s1204_s0 = scalar_lea.hbm %s1203_s12, 128  ;;  %p1210_p0 = scmp.lt.s32.totalorder %s1203_s12, %s1743_s4 }
  0x3a   : > { %p1205_p11 = scmp.ne.s32.totalorder %s1203_s12, %s1204_s0  ;;  %p1211_p2 = scmp.lt.s32.totalorder %s1209_s16, %s1204_s0 }
  0x3c   : > { %p1207_p12 = pnand %p1205_p11, %p1146_p7  ;;  %p1212_p3 = por %p1211_p2, %p1210_p0 }
  0x3e   : > { %p1208_p13 = pneg %p1207_p12 }
  0x40   : > { %p1213_p9 = pnand %p1212_p3, %p1208_p13 }
  0x42   : > { %1216 = shalt.err (!%p1213_p9)
}
  0x43   : > { %s1744_s18 = smov 8   ;;  %s1745_s24 = smov 128  }
  0x44   : > { %1081 = dma.hbm_to_vmem [thread:$0]  (!%p1457_p5), %s425_s30, 2048, %s427_s29, %s1461_s27, %s1745_s24, %s1745_s24, %s1744_s18  }
  0x45   : > { %s1746_s8 = sld [smem:[#allocation21_spill]]  ;;  %s458_s12 = scalar_lea.vmem [#allocation8], %s1445_s13 }
  0x46   : > { %s466_s0 = sshll.u32 %s458_s12, 4  ;;  %s1747_s21 = sand.u32 1, %s1332_s23   ;;  %s467_s0 = int_to_ptr.vmem [resolvable:$true] %s466_s0 }
  0x47   : > { %s455_s16 = scalar_lea.sflag [#allocation9], %s1747_s21 }
  0x4b   : > { %s463_s1 = scalar_lea.hbm %s1746_s8, %s1448_s14  ;;  %s1239_s30 = scalar_lea.hbm %s1746_s8, 256 }
  0x4c   : > { %s464_s15 = sshll.u32 %s463_s1, 4  ;;  %s465_s15 = int_to_ptr.hbm [resolvable:$true] %s464_s15 }
  0x4d   : > { %s1232_s17 = sshra.s32 %s465_s15, 4  ;;  %s1233_s17 = int_to_ptr.hbm [resolvable:$true] %s1232_s17 }
  0x4e   : > { %s1234_s4 = scalar_lea.hbm %s1233_s17, 128  ;;  %p1240_p13 = scmp.lt.s32.totalorder %s1233_s17, %s1746_s8 }
  0x4f   : > { %p1235_p10 = scmp.ne.s32.totalorder %s1233_s17, %s1234_s4  ;;  %p1241_p0 = scmp.lt.s32.totalorder %s1239_s30, %s1234_s4 }
  0x51   : > { %p1237_p11 = pnand %p1235_p10, %p1146_p7  ;;  %p1242_p2 = por %p1241_p0, %p1240_p13 }
  0x53   : > { %p1238_p12 = pneg %p1237_p11 }
  0x55   : > { %p1243_p3 = pnand %p1242_p2, %p1238_p12 }
  0x57   : > { %1246 = shalt.err (!%p1243_p3)
}
  0x58   : > { %1084 = dma.hbm_to_vmem [thread:$0]  (!%p1457_p5), %s465_s15, 2048, %s467_s0, %s455_s16, %s1745_s24, %s1745_s24, %s1744_s18  }
  0x59   : > { %496 = sbr.rel (%p1498_p8) target bundleno = 1015 (0x3f7), region = 68 }
  0x5e   : > { %1307 = dma.done.wait (%p93_p1), [#allocation3], 128  }
  0x5f   : > { %1309 = vsyncadd (%p93_p1), [#allocation3], 4294967168  ;;  %s503_s4 = sand.u32 1, %s1481_s25   ;;  %s505_s2 = sand.u32 1, %s1328_s22  }
  0x60   : > { %s1044_s19 = sshll.u32 %s505_s2, 7  ;;  %s504_s26 = scalar_lea.sflag [#allocation6], %s503_s4 }
  0x61   : > { %s1555_s1 = scalar_lea.vmem [#allocation5], %s1044_s19 }
  0x62   : > { %1311 = dma.done.wait (%p1491_p6), %s504_s26, 4096  }
  0x63   : > { %1313 = vsyncadd (%p1491_p6), %s504_s26, 4294963200  ;;  %s1561_s20 = scalar_lea.vmem [#allocation7], %s1044_s19  ;;  %s524_s18 = scalar_lea.sflag [#allocation9], %s505_s2 }
  0x64   : > { %s1563_s24 = scalar_lea.vmem [#allocation8], %s1044_s19 }
  0x65   : > { %1315 = dma.done.wait (%p1491_p6), %s524_s18, 2048  }
  0x66   : > { %1317 = vsyncadd (%p1491_p6), %s524_s18, 4294965248  ;;  %p595_p5 = scmp.lt.s32.totalorder %s1481_s25, 1 }
  0x68   : > { %s1571_s12 = scalar_select %p595_p5, %s1481_s25, 1 }
  0x69   : > { %619 = sbr.rel (%p1031_p4) target bundleno = 112 (0x70), region = 88 }
  0x6a   : > { %s600_s28 = scalar_lea.vmem %s1715_s5, %s1571_s12  ;;  %s603_s30 = scalar_lea.vmem %s1716_s6, %s1571_s12 }
  0x6b   : > { %s606_s4 = scalar_lea.vmem %s1717_s7, %s1571_s12  ;;  %s609_s26 = scalar_lea.vmem %s1719_s9, %s1571_s12 }
  0x6c   : > { %s612_s15 = scalar_lea.vmem %s1720_s10, %s1571_s12  ;;  %s615_s16 = scalar_lea.vmem %s1721_s11, %s1571_s12 }
  0x6e   : > { %v620_v0 = vld [vmem:[#allocation2] sm:$0xff] }
  0x6f   : > { %621 = vst [vmem:[#allocation10] sm:$0xff] %v620_v0 }
  0x70 PF: > { %v650_v1 = vld [vmem:[%s1555_s1 + $0x78] sm:$0xff]  ;;  %v649_v2 = vld [vmem:[%s1555_s1 + $0x70] sm:$0xff]  ;;  %v648_v3 = vld [vmem:[%s1555_s1 + $0x68] sm:$0xff]  ;;  %s1748_s17 = scalar_lea.vmem %s1713_s3, %s1571_s12  ;;  %v630_v38 = vlaneseq  ;;  %v1341_v43 = vmov 0.0   ;;  %s1749_s19 = sld [smem:[#allocation18_spill]]  ;;  %vm751_vm3 = vcmask 64512  }
  0x71   : > { %654 = vmatpush.msra.mxu0 %v650_v1  ;;  %v647_v4 = vld [vmem:[%s1555_s1 + $0x60] sm:$0xff]  ;;  %v690_v5 = vld [vmem:[%s1561_s20 + $0x78] sm:$0xff]  ;;  %v689_v7 = vld [vmem:[%s1561_s20 + $0x70] sm:$0xff]  ;;  %s1342_s8 = smov [#allocation10]   ;;  %s1750_s27 = sld [smem:[#allocation22_spill]] }
  0x72   : > { %v646_v6 = vld [vmem:[%s1555_s1 + $0x58] sm:$0xff]  ;;  %694 = vmatpush.msra.mxu1 %v690_v5  ;;  %v688_v8 = vld [vmem:[%s1561_s20 + $0x68] sm:$0xff]  ;;  %v645_v9 = vld [vmem:[%s1555_s1 + $0x50] sm:$0xff]  ;;  %v631_v39 = vand.u32 127, %v630_v38  ;;  %s858_s21 = sshll.u32 %s1342_s8, 4  ;;  %p1088_p7 = scmp.eq.s32.totalorder %s1481_s25, 1  ;;  %s859_s21 = int_to_ptr.vmem [resolvable:$true] %s858_s21 }
  0x73   : > { %655 = vmatpush.msra.mxu0 %v649_v2  ;;  %v644_v10 = vld [vmem:[%s1555_s1 + $0x48] sm:$0xff]  ;;  %v687_v11 = vld [vmem:[%s1561_s20 + $0x60] sm:$0xff]  ;;  %v686_v12 = vld [vmem:[%s1561_s20 + $0x58] sm:$0xff] }
  0x74   : > { %695 = vmatpush.msra.mxu1 %v689_v7  ;;  %v643_v13 = vld [vmem:[%s1555_s1 + $0x40] sm:$0xff]  ;;  %v685_v14 = vld [vmem:[%s1561_s20 + $0x50] sm:$0xff]  ;;  %v642_v15 = vld [vmem:[%s1555_s1 + $0x38] sm:$0xff]  ;;  %vm632_vm0 = vcmp.lt.s32.totalorder %v631_v39, 32 }
  0x75   : > { %656 = vmatpush.msra.mxu0 %v648_v3  ;;  %v684_v16 = vld [vmem:[%s1561_s20 + $0x48] sm:$0xff]  ;;  %v641_v17 = vld [vmem:[%s1555_s1 + $0x30] sm:$0xff]  ;;  %v683_v18 = vld [vmem:[%s1561_s20 + $0x40] sm:$0xff]  ;;  %v1645_v44 = vsel %vm632_vm0, 1.0, %v1341_v43 }
  0x76   : > { %696 = vmatpush.msra.mxu1 %v688_v8  ;;  %v640_v19 = vld [vmem:[%s1555_s1 + $0x28] sm:$0xff]  ;;  %v682_v20 = vld [vmem:[%s1561_s20 + $0x38] sm:$0xff]  ;;  %v639_v21 = vld [vmem:[%s1555_s1 + $0x20] sm:$0xff] }
  0x77   : > { %657 = vmatpush.msra.mxu0 %v647_v4  ;;  %v681_v22 = vld [vmem:[%s1561_s20 + $0x30] sm:$0xff]  ;;  %v638_v23 = vld [vmem:[%s1555_s1 + $0x18] sm:$0xff]  ;;  %v680_v24 = vld [vmem:[%s1561_s20 + $0x28] sm:$0xff] }
  0x78   : > { %697 = vmatpush.msra.mxu1 %v687_v11  ;;  %v637_v25 = vld [vmem:[%s1555_s1 + $0x10] sm:$0xff]  ;;  %v679_v26 = vld [vmem:[%s1561_s20 + $0x20] sm:$0xff]  ;;  %v636_v27 = vld [vmem:[%s1555_s1 + $0x8] sm:$0xff] }
  0x79   : > { %658 = vmatpush.msra.mxu0 %v646_v6  ;;  %v678_v28 = vld [vmem:[%s1561_s20 + $0x18] sm:$0xff]  ;;  %v635_v29 = vld [vmem:[%s1555_s1] sm:$0xff]  ;;  %v677_v31 = vld [vmem:[%s1561_s20 + $0x10] sm:$0xff] }
  0x7a   : > { %698 = vmatpush.msra.mxu1 %v686_v12  ;;  %v622_v30 = vld [vmem:[#allocation10] sm:$0xff]  ;;  %v676_v32 = vld [vmem:[%s1561_s20 + $0x8] sm:$0xff]  ;;  %v1127_v34 = vld [vmem:[%s1748_s17] ss:$0 sm:$0xff] }
  0x7b   : > { %659 = vmatpush.msra.mxu0 %v645_v9  ;;  %v675_v33 = vld [vmem:[%s1561_s20] sm:$0xff]  ;;  %v1128_v40 = vld [vmem:[%s600_s28] ss:$0 sm:$0xff]  ;;  %v789_v56 = vld [vmem:[%s1563_s24 + $0x70] sm:$0xff]  ;;  %s860_s20 = sshll.u32 %s1750_s27, 4  ;;  %s861_s20 = int_to_ptr.hbm [resolvable:$true] %s860_s20 }
  0x7c   : > { %699 = vmatpush.msra.mxu1 %v685_v14  ;;  %v790_v55 = vld [vmem:[%s1563_s24 + $0x78] sm:$0xff]  ;;  %v788_v59 = vld [vmem:[%s1563_s24 + $0x68] sm:$0xff]  ;;  %v787_v61 = vld [vmem:[%s1563_s24 + $0x60] sm:$0xff] }
  0x7d   : > { %660 = vmatpush.msra.mxu0 %v644_v10  ;;  %794 = vmatpush.msra.mxu3 %v790_v55  ;;  %v786_v63 = vld [vmem:[%s1563_s24 + $0x58] sm:$0xff]  ;;  %v785_v1 = vld [vmem:[%s1563_s24 + $0x50] sm:$0xff]  ;;  %v784_v3 = vld [vmem:[%s1563_s24 + $0x48] sm:$0xff] }
  0x7e   : > { %700 = vmatpush.msra.mxu1 %v684_v16  ;;  %v783_v5 = vld [vmem:[%s1563_s24 + $0x40] sm:$0xff]  ;;  %v782_v8 = vld [vmem:[%s1563_s24 + $0x38] sm:$0xff]  ;;  %v781_v11 = vld [vmem:[%s1563_s24 + $0x30] sm:$0xff] }
  0x7f   : > { %661 = vmatpush.msra.mxu0 %v643_v13  ;;  %795 = vmatpush.msra.mxu3 %v789_v56  ;;  %v780_v12 = vld [vmem:[%s1563_s24 + $0x28] sm:$0xff]  ;;  %v779_v13 = vld [vmem:[%s1563_s24 + $0x20] sm:$0xff]  ;;  %v778_v14 = vld [vmem:[%s1563_s24 + $0x18] sm:$0xff] }
  0x80   : > { %701 = vmatpush.msra.mxu1 %v683_v18  ;;  %v1129_v16 = vld [vmem:[%s603_s30] ss:$0 sm:$0xff]  ;;  %v777_v18 = vld [vmem:[%s1563_s24 + $0x10] sm:$0xff] }
  0x81   : > { %662 = vmatpush.msra.mxu0 %v642_v15  ;;  %796 = vmatpush.msra.mxu3 %v788_v59  ;;  %v1133_v56 = vld [vmem:[%s615_s16] ss:$0 sm:$0xff] }
  0x82   : > { %702 = vmatpush.msra.mxu1 %v682_v20  ;;  %v1130_v20 = vld [vmem:[%s606_s4] ss:$0 sm:$0xff] }
  0x83   : > { %663 = vmatpush.msra.mxu0 %v641_v17  ;;  %797 = vmatpush.msra.mxu3 %v787_v61 }
  0x84   : > { %703 = vmatpush.msra.mxu1 %v681_v22 }
  0x85   : > { %664 = vmatpush.msra.mxu0 %v640_v19  ;;  %798 = vmatpush.msra.mxu3 %v786_v63 }
  0x86   : > { %704 = vmatpush.msra.mxu1 %v680_v24  ;;  %v750_v24 = vld [vmem:[%s1749_s19] sm:$0xff] }
  0x87   : > { %665 = vmatpush.msra.mxu0 %v639_v21  ;;  %799 = vmatpush.msra.mxu3 %v785_v1  ;;  %v776_v21 = vld [vmem:[%s1563_s24 + $0x8] sm:$0xff] }
  0x88   : > { %705 = vmatpush.msra.mxu1 %v679_v26 }
  0x89   : > { %666 = vmatpush.msra.mxu0 %v638_v23  ;;  %800 = vmatpush.msra.mxu3 %v784_v3 }
  0x8a   : > { %706 = vmatpush.msra.mxu1 %v678_v28 }
  0x8b   : > { %667 = vmatpush.msra.mxu0 %v637_v25  ;;  %801 = vmatpush.msra.mxu3 %v783_v5  ;;  %v775_v25 = vld [vmem:[%s1563_s24] sm:$0xff] }
  0x8c   : > { %707 = vmatpush.msra.mxu1 %v677_v31 }
  0x8d   : > { %668 = vmatpush.msra.mxu0 %v636_v27  ;;  %802 = vmatpush.msra.mxu3 %v782_v8  ;;  %v1131_v27 = vld [vmem:[%s609_s26] ss:$0 sm:$0xff] }
  0x8e   : > { %708 = vmatpush.msra.mxu1 %v676_v32 }
  0x8f   : > { %669 = vmatpush.msra.mxu0 %v635_v29  ;;  %803 = vmatpush.msra.mxu3 %v781_v11 }
  0x90   : > { %670 = vmatmul.f32.vlgmr.msra.gmra.mxu0 %v622_v30  ;;  %709 = vmatpush.msra.mxu1 %v675_v33 }
  0x91   : > { %804 = vmatpush.msra.mxu3 %v780_v12 }
  0x93   : > { %805 = vmatpush.msra.mxu3 %v779_v13 }
  0x95   : > { %806 = vmatpush.msra.mxu3 %v778_v14 }
  0x97   : > { %807 = vmatpush.msra.mxu3 %v777_v18 }
  0x99   : > { %808 = vmatpush.msra.mxu3 %v776_v21 }
  0x9b   : > { %809 = vmatpush.msra.mxu3 %v775_v25 }
 0x10d   : > { %v671_v35 = vpop.f32.mrf.mxu0 }
 0x10e   : > { %v672_v36 = vadd.f32 %v1127_v34, %v671_v35 }
 0x110   : > { %v674_v37 = vmax.f32 %v672_v36, 0.0 }
 0x112   : > { %710 = vmatmul.f32.vlgmr.msra.gmra.mxu1 %v674_v37 }
 0x18f   : > { %v711_v41 = vpop.f32.mrf.mxu1 }
 0x190   : > { %v712_v42 = vadd.f32 %v1128_v40, %v711_v41 }
 0x192   : > { %v714_v45 = vadd.f32 %v712_v42, %v622_v30 }
 0x194   : > { %v715_v46 = vmul.f32 %v1645_v44, %v714_v45 }
 0x196   : > { %716 = vadd.xlane.f32.xlu0 %v715_v46  ;;  %v718_v47 = vmul.f32 %v715_v46, %v715_v46 }
 0x19e   : > { %719 = vadd.xlane.f32.xlu0 %v718_v47 }
 0x209   : > { %v717_v48 = vpop.xlane.xlu0 %716 }
 0x20a   : > { %v721_v49 = vmul.f32 0.03125, %v717_v48 }
 0x20c   : > { %v723_v51 = vmul.f32 %v721_v49, %v721_v49  ;;  %v740_v15 = vsub.f32 %v714_v45, %v721_v49 }
 0x211   : > { %v720_v50 = vpop.xlane.xlu0 %719 }
 0x212   : > { %v722_v52 = vmul.f32 0.03125, %v720_v50 }
 0x214   : > { %v724_v53 = vsub.f32 %v722_v52, %v723_v51 }
 0x216   : > { %v725_v54 = vmax.f32 %v724_v53, 0.0  ;;  %v1132_v53 = vld [vmem:[%s612_s15] ss:$0 sm:$0xff] }
 0x218   : > { %1134 = vrsqrt.f32 %v725_v54  ;;  %vm733_vm1 = vcmp.eq.f32.partialorder %v725_v54, inf  ;;  %v736_v6 = vand.u32 2147483648, %v725_v54  ;;  %vm735_vm2 = vcmp.eq.f32.partialorder %v725_v54, 0.0 }
 0x21e   : > { %v1135_v57 = vpop.eup %1134 }
 0x21f   : > { %v727_v58 = vmul.f32 %v1135_v57, %v725_v54 }
 0x221   : > { %v728_v60 = vmul.f32 %v1135_v57, %v727_v58 }
 0x223   : > { %v729_v62 = vmul.f32 0.5, %v728_v60 }
 0x225   : > { %v730_v0 = vsub.f32 1.5, %v729_v62 }
 0x227   : > { %v731_v2 = vmul.f32 %v1135_v57, %v730_v0 }
 0x229   : > { %v732_v4 = vmul.f32 %v731_v2, %v725_v54 }
 0x22b   : > { %v734_v7 = vsel %vm733_vm1, %v725_v54, %v732_v4 }
 0x22c   : > { %v737_v9 = vsel %vm735_vm2, %v736_v6, %v734_v7 }
 0x22d   : > { %v738_v10 = vadd.f32 1e-06, %v737_v9 }
 0x22f   : > { %1136 = vrcp.f32 %v738_v10 }
 0x235   : > { %v1137_v17 = vpop.eup %1136 }
 0x236   : > { %v741_v19 = vmul.f32 %v1137_v17, %v740_v15 }
 0x238   : > { %v745_v22 = vmul.f32 %v1129_v16, %v741_v19 }
 0x23a   : > { %v749_v23 = vadd.f32 %v1130_v20, %v745_v22 }
 0x23c   : > { %770 = vmatpush.msra.mxu2 %v749_v23 }
 0x23d   : > { %1049 = vmatmul.msk.f32.vlgmr.msra.gmra.mxu2 %vm751_vm3, %v750_v24 }
 0x2c0   : > { %v772_v26 = vpop.f32.mrf.mxu2 }
 0x2c1   : > { %810 = vmatmul.f32.vlgmr.msra.gmra.mxu3 %v772_v26 }
 0x344   : > { %v811_v28 = vpop.f32.mrf.mxu3 }
 0x345   : > { %v812_v29 = vadd.f32 %v1131_v27, %v811_v28 }
 0x347   : > { %v814_v30 = vmax.f32 %v812_v29, 0.0 }
 0x349   : > { %v815_v31 = vadd.f32 %v814_v30, %v749_v23 }
 0x34b   : > { %v816_v32 = vmul.f32 %v1645_v44, %v815_v31 }
 0x34d   : > { %817 = vadd.xlane.f32.xlu1 %v816_v32  ;;  %v819_v33 = vmul.f32 %v816_v32, %v816_v32 }
 0x355   : > { %820 = vadd.xlane.f32.xlu1 %v819_v33 }
 0x3c0   : > { %v818_v34 = vpop.xlane.xlu1 %817 }
 0x3c1   : > { %v822_v35 = vmul.f32 0.03125, %v818_v34 }
 0x3c3   : > { %v824_v37 = vmul.f32 %v822_v35, %v822_v35  ;;  %v841_v52 = vsub.f32 %v815_v31, %v822_v35 }
 0x3c8   : > { %v821_v36 = vpop.xlane.xlu1 %820 }
 0x3c9   : > { %v823_v38 = vmul.f32 0.03125, %v821_v36 }
 0x3cb   : > { %v825_v39 = vsub.f32 %v823_v38, %v824_v37 }
 0x3cd   : > { %v826_v40 = vmax.f32 %v825_v39, 0.0 }
 0x3cf   : > { %1138 = vrsqrt.f32 %v826_v40  ;;  %vm834_vm4 = vcmp.eq.f32.partialorder %v826_v40, inf  ;;  %v837_v48 = vand.u32 2147483648, %v826_v40  ;;  %vm836_vm5 = vcmp.eq.f32.partialorder %v826_v40, 0.0 }
 0x3d5   : > { %v1139_v41 = vpop.eup %1138 }
 0x3d6   : > { %v828_v42 = vmul.f32 %v1139_v41, %v826_v40 }
 0x3d8   : > { %v829_v43 = vmul.f32 %v1139_v41, %v828_v42 }
 0x3da   : > { %v830_v45 = vmul.f32 0.5, %v829_v43 }
 0x3dc   : > { %v831_v46 = vsub.f32 1.5, %v830_v45 }
 0x3de   : > { %v832_v47 = vmul.f32 %v1139_v41, %v831_v46 }
 0x3e0   : > { %v833_v44 = vmul.f32 %v832_v47, %v826_v40 }
 0x3e2   : > { %v835_v49 = vsel %vm834_vm4, %v826_v40, %v833_v44 }
 0x3e3   : > { %v838_v50 = vsel %vm836_vm5, %v837_v48, %v835_v49 }
 0x3e4   : > { %v839_v51 = vadd.f32 1e-06, %v838_v50 }
 0x3e6   : > { %1140 = vrcp.f32 %v839_v51 }
 0x3ec   : > { %v1141_v54 = vpop.eup %1140 }
 0x3ed   : > { %v842_v55 = vmul.f32 %v1141_v54, %v841_v52 }
 0x3ef   : > { %v846_v57 = vmul.f32 %v1132_v53, %v842_v55 }
 0x3f1   : > { %v850_v58 = vadd.f32 %v1133_v56, %v846_v57 }
 0x3f3   : > { %851 = vst [vmem:[#allocation10] sm:$0xff] %v850_v58 }
 0x3f4   : > { %1068 = dma.vmem_to_hbm [thread:$0]  (%p1088_p7), %s859_s21, 128, %s861_s20, [#allocation4]  }
 0x3f5   : > { %1319 = dma.done.wait (%p1088_p7), [#allocation4], 128  }
 0x3f6   : > { %1321 = vsyncadd (%p1088_p7), [#allocation4], 4294967168 }
 0x3f7 PF: > { %s1751_s24 = sld [smem:[#allocation15_spill]]  ;;  %s1753_s21 = smov %s1328_s22 }
 0x3f8   : > { %s1752_s12 = sld [smem:[#allocation16_spill]]  ;;  %s1754_s22 = smov %s1332_s23 }
 0x3fd   : > { %p27_p1 = scmp.ge.s32.totalorder %s1751_s24, 4  }
 0x3fe   : > { %s1755_s23 = smov %s1752_s12 }
 0x3ff   :  { %29 = sbr.rel (!%p27_p1) target bundleno = 14 (0xe), region = 159 }
 0x404   :  { %874 = vsyncpa [#allocation3], 1 }
 0x405   :  { %876 = vsyncpa [#allocation3 + $0x1], 1 }
 0x406   :  { %877 = vsyncpa [#allocation6], 1 }
 0x407   :  { %879 = vsyncpa [#allocation6 + $0x1], 1 }
 0x408   :  { %880 = vsyncpa [#allocation9], 1 }
 0x409   :  { %882 = vsyncpa [#allocation9 + $0x1], 1 }
 0x40a   :  { %883 = vsyncpa [#allocation4], 1 }
 0x40b   :  { %885 = vsyncpa [#allocation4 + $0x1], 1 }

</bundles_post_ra>
